<compile_context>
chip_gen: v7x
topology: tpu7x:2x2x1
jax: 0.10.0
libtpu: 0.0.40
codegen_flags: <defaults>
</compile_context>

<pallas_src>
import jax
import jax.numpy as jnp
from jax import lax
from jax.experimental import pallas as pl
from jax.experimental.pallas import tpu as pltpu


def _upconv_kernel(x_ref, m_ref, b_ref, o_ref):
    """Fused nearest-x2-upsample + 3x3 conv via the 4-phase (2x2-tap) decomposition.

    x_ref: (1, H+2, (W+2)*C)   zero-padded ORIGINAL input, NHWC with (W, C) fused on lanes
    m_ref: (3, (W+2)*C, 2*Wu*C) packed weight matrices, one per padded-input row offset;
                               columns [0:Wu*C] = output-row phase py=0, [Wu*C:] = py=1.
                               They already embed the column-phase interleave and the
                               Cin->Cout mixing.
    b_ref: (1, 2*Wu*C)         bias pre-tiled to the output lane layout
    o_ref: (1, 2, H, Wu*C)     output: [n, py, i, (2j+px)*C + co]
    """
    H = o_ref.shape[2]
    L = o_ref.shape[3]                      # Wu*C  (= 128 at the demo shapes)

    # Bias folded into the accumulator init (no extra VPU pass at the end).
    acc = jnp.broadcast_to(b_ref[...], (H, 2 * L)).astype(jnp.float32)

    # Three MXU matmuls; row offset s of the padded input feeds both output-row phases.
    # Contraction = (W+2)*C, output = 2*Wu*C; accumulator stays resident in a few vregs.
    for s in range(3):
        acc = acc + jnp.dot(x_ref[0, s:s + H, :], m_ref[s],
                            preferred_element_type=jnp.float32)

    # Lane-group-aligned split (at lane 128): both stores are full, unmasked (H, 128) tiles.
    o_ref[0, 0, :, :] = acc[:, :L].astype(o_ref.dtype)
    o_ref[0, 1, :, :] = acc[:, L:].astype(o_ref.dtype)


def _build_phase_weights(weight_oihw, bias, W):
    """Precompute packed matrices implementing upsample-x2 + 3x3 conv as 2x2 convs over
    the ORIGINAL input (one per output sub-pixel phase), with the column-phase interleave
    and channel mixing folded in."""
    Cout, Cin, _, _ = weight_oihw.shape
    dt = weight_oihw.dtype
    Wp = W + 2

    # For output phase p (0/1) and conv tap d (0..2): window index r = (p+d-1)//2 + 1 - p.
    ph = jnp.arange(2)
    d = jnp.arange(3)
    rmap = (ph[:, None] + d[None, :] - 1) // 2 + 1 - ph[:, None]            # (2, 3)
    R = (rmap[:, :, None] == jnp.arange(2)[None, None, :]).astype(dt)       # (2, 3, 2)

    # Effective 2x2 kernels per (py, px) phase: tap-sums of the 3x3 weights.
    # keff[py, px, r, c, ci, co]
    keff = jnp.einsum('pdr,qec,oide->pqrcio', R, R, weight_oihw)            # (2,2,2,2,Ci,Co)

    # Column scatter: S[jp, j, px, c] = 1 iff padded input column jp == j + px + c.
    j = jnp.arange(W)
    c = jnp.arange(2)
    jp = jnp.arange(Wp)
    S = (jp[:, None, None, None]
         == (j[None, :, None, None] + ph[None, None, :, None]
             + c[None, None, None, :])).astype(dt)                          # (Wp, W, 2, 2)

    # M[py, r, jp, ci, j, px, co]  ->  (2, 2, Wp*Cin, W*2*Cout)
    M = jnp.einsum('ajqc,pqrcio->praijqo', S, keff)
    M = M.reshape(2, 2, Wp * Cin, W * 2 * Cout)

    # Pack per padded-input row offset s in {0,1,2}; columns = [phase py=0 | phase py=1].
    z = jnp.zeros_like(M[0, 0])
    m_cat = jnp.stack([
        jnp.concatenate([M[0, 0], z], axis=1),
        jnp.concatenate([M[0, 1], M[1, 0]], axis=1),
        jnp.concatenate([z, M[1, 1]], axis=1),
    ], axis=0)                                                              # (3, Wp*C, 2*Wu*C)

    # Bias tiled to the output lane layout: lane = (2j+px)*C + co, two phases concatenated.
    b_row = jnp.tile(bias, 4 * W).reshape(1, 4 * W * Cout)
    return m_cat, b_row


@jax.jit
def up_sample_forward(x_nchw, weight_oihw, bias):
    """Equivalent of up_sample.forward(x). x_nchw: (N, C, H, W) float32 -> (N, C, 2H, 2W)."""
    N, C, H, W = x_nchw.shape
    Hu, Wu = 2 * H, 2 * W
    L = Wu * C                                   # output lanes per row phase (128 here)

    # --- light glue: halo-pad the ORIGINAL input; no upsampled intermediate in HBM ---
    x = jnp.transpose(x_nchw, (0, 2, 3, 1))                  # (N, H, W, C)
    x = jnp.pad(x, ((0, 0), (1, 1), (1, 1), (0, 0)))         # (N, H+2, W+2, C)
    x = x.reshape(N, H + 2, (W + 2) * C)                     # (W, C) fused on lanes

    m_cat, b_row = _build_phase_weights(weight_oihw, bias, W)

    out = pl.pallas_call(
        _upconv_kernel,
        out_shape=jax.ShapeDtypeStruct((N, 2, H, L), x.dtype),
        grid=(N,),
        in_specs=[
            pl.BlockSpec((1, H + 2, (W + 2) * C), lambda n: (n, 0, 0)),
            pl.BlockSpec((3, (W + 2) * C, 2 * L), lambda n: (0, 0, 0)),
            pl.BlockSpec((1, 2 * L), lambda n: (0, 0)),
        ],
        out_specs=pl.BlockSpec((1, 2, H, L), lambda n: (n, 0, 0, 0)),
        compiler_params=pltpu.CompilerParams(
            dimension_semantics=("parallel",)),
    )(x, m_cat, b_row)

    # out[n, py, i, (2j+px)*C + co]  ->  NCHW (tiny epilogue reshapes/transposes)
    out = out.reshape(N, 2, H, Wu, C)
    out = jnp.transpose(out, (0, 2, 1, 3, 4)).reshape(N, Hu, Wu, C)
    return jnp.transpose(out, (0, 3, 1, 2))


def _reference_forward(x_nchw, weight_oihw, bias):
    """Pure-JAX reference (nearest x2 upsample + lax conv) for validation."""
    x_up = jnp.repeat(jnp.repeat(x_nchw, 2, axis=2), 2, axis=3)
    y = lax.conv_general_dilated(
        x_up, weight_oihw,
        window_strides=(1, 1), padding=((1, 1), (1, 1)),
        dimension_numbers=("NCHW", "OIHW", "NCHW"))
    return y + bias.reshape(1, -1, 1, 1)


if __name__ == "__main__":
    # Small shapes consistent with the module: batch=2, ch_in=4, spatial=16.
    N, C, H, W = 2, 4, 16, 16

    key = jax.random.PRNGKey(0)
    kx, kw, kb = jax.random.split(key, 3)

    x = jax.random.normal(kx, (N, C, H, W), dtype=jnp.float32)

    # Deterministic Conv2d(ch_in, ch_in, 3) params (PyTorch-style uniform init).
    fan_in = C * 3 * 3
    bound = 1.0 / jnp.sqrt(jnp.float32(fan_in))
    weight = jax.random.uniform(kw, (C, C, 3, 3), jnp.float32, -bound, bound)  # OIHW
    bias = jax.random.uniform(kb, (C,), jnp.float32, -bound, bound)

    out = up_sample_forward(x, weight, bias)
    out = jax.block_until_ready(out)

    ref = jax.block_until_ready(_reference_forward(x, weight, bias))

    assert out.shape == (N, C, 2 * H, 2 * W), out.shape
    assert jnp.allclose(out, ref, atol=2e-3, rtol=2e-3), float(jnp.max(jnp.abs(out - ref)))

    print("KERNEL_OK")
</pallas_src>

<mosaic_0001>
module attributes {stable_mosaic.version = 11 : i64} {
  func.func @_upconv_kernel(%arg0: i32, %arg1: memref<1x18x72xf32, #tpu.memory_space<vmem>>, %arg2: memref<3x72x256xf32, #tpu.memory_space<vmem>>, %arg3: memref<1x256xf32, #tpu.memory_space<vmem>>, %arg4: memref<1x2x16x128xf32, #tpu.memory_space<vmem>>) attributes {dimension_semantics = [#tpu.dimension_semantics<parallel>], iteration_bounds = array<i64: 2>, scalar_prefetch = 0 : i64, scratch_operands = 0 : i64, tpu.core_type = #tpu.core_type<tc>, window_params = [{transform_indices = @transform_0, window_bounds = array<i64: 1, 18, 72>}, {pipeline_mode = #tpu.pipeline_mode<synchronous>, transform_indices = @transform_1, window_bounds = array<i64: 3, 72, 256>}, {pipeline_mode = #tpu.pipeline_mode<synchronous>, transform_indices = @transform_2, window_bounds = array<i64: 1, 256>}, {transform_indices = @transform_3, window_bounds = array<i64: 1, 2, 16, 128>}]} {
    %c0 = arith.constant 0 : index
    %c0_0 = arith.constant 0 : index
    %0 = vector.load %arg3[%c0, %c0_0] : memref<1x256xf32, #tpu.memory_space<vmem>>, vector<1x256xf32>
    %1 = vector.shape_cast %0 : vector<1x256xf32> to vector<1x256xf32>
    %2 = vector.broadcast %1 : vector<1x256xf32> to vector<16x256xf32>
    %c0_1 = arith.constant 0 : index
    %c0_2 = arith.constant 0 : index
    %c0_3 = arith.constant 0 : index
    %3 = vector.load %arg1[%c0_1, %c0_2, %c0_3] : memref<1x18x72xf32, #tpu.memory_space<vmem>>, vector<1x16x72xf32>
    %4 = vector.shape_cast %3 : vector<1x16x72xf32> to vector<16x72xf32>
    %c0_4 = arith.constant 0 : index
    %c0_5 = arith.constant 0 : index
    %c0_6 = arith.constant 0 : index
    %5 = vector.load %arg2[%c0_4, %c0_5, %c0_6] : memref<3x72x256xf32, #tpu.memory_space<vmem>>, vector<1x72x256xf32>
    %6 = vector.shape_cast %5 : vector<1x72x256xf32> to vector<72x256xf32>
    %cst = arith.constant dense<0.000000e+00> : vector<16x256xf32>
    %7 = tpu.matmul %4, %6, %cst {dimension_numbers = #tpu.dot_dimension_numbers<[1], [0], [0], [1], [0, 0, 1, 1], [], []>} : vector<16x72xf32>, vector<72x256xf32>, vector<16x256xf32> -> vector<16x256xf32>
    %8 = arith.addf %2, %7 : vector<16x256xf32>
    %c0_7 = arith.constant 0 : index
    %c1 = arith.constant 1 : index
    %c0_8 = arith.constant 0 : index
    %9 = vector.load %arg1[%c0_7, %c1, %c0_8] : memref<1x18x72xf32, #tpu.memory_space<vmem>>, vector<1x16x72xf32>
    %10 = vector.shape_cast %9 : vector<1x16x72xf32> to vector<16x72xf32>
    %c1_9 = arith.constant 1 : index
    %c0_10 = arith.constant 0 : index
    %c0_11 = arith.constant 0 : index
    %11 = vector.load %arg2[%c1_9, %c0_10, %c0_11] : memref<3x72x256xf32, #tpu.memory_space<vmem>>, vector<1x72x256xf32>
    %12 = vector.shape_cast %11 : vector<1x72x256xf32> to vector<72x256xf32>
    %cst_12 = arith.constant dense<0.000000e+00> : vector<16x256xf32>
    %13 = tpu.matmul %10, %12, %cst_12 {dimension_numbers = #tpu.dot_dimension_numbers<[1], [0], [0], [1], [0, 0, 1, 1], [], []>} : vector<16x72xf32>, vector<72x256xf32>, vector<16x256xf32> -> vector<16x256xf32>
    %14 = arith.addf %8, %13 : vector<16x256xf32>
    %c0_13 = arith.constant 0 : index
    %c2 = arith.constant 2 : index
    %c0_14 = arith.constant 0 : index
    %15 = vector.load %arg1[%c0_13, %c2, %c0_14] : memref<1x18x72xf32, #tpu.memory_space<vmem>>, vector<1x16x72xf32>
    %16 = vector.shape_cast %15 : vector<1x16x72xf32> to vector<16x72xf32>
    %c2_15 = arith.constant 2 : index
    %c0_16 = arith.constant 0 : index
    %c0_17 = arith.constant 0 : index
    %17 = vector.load %arg2[%c2_15, %c0_16, %c0_17] : memref<3x72x256xf32, #tpu.memory_space<vmem>>, vector<1x72x256xf32>
    %18 = vector.shape_cast %17 : vector<1x72x256xf32> to vector<72x256xf32>
    %cst_18 = arith.constant dense<0.000000e+00> : vector<16x256xf32>
    %19 = tpu.matmul %16, %18, %cst_18 {dimension_numbers = #tpu.dot_dimension_numbers<[1], [0], [0], [1], [0, 0, 1, 1], [], []>} : vector<16x72xf32>, vector<72x256xf32>, vector<16x256xf32> -> vector<16x256xf32>
    %20 = arith.addf %14, %19 : vector<16x256xf32>
    %21 = vector.extract_strided_slice %20 {offsets = [0, 0], sizes = [16, 128], strides = [1, 1]} : vector<16x256xf32> to vector<16x128xf32>
    %c0_19 = arith.constant 0 : index
    %c0_20 = arith.constant 0 : index
    %c0_21 = arith.constant 0 : index
    %c0_22 = arith.constant 0 : index
    %22 = vector.load %arg4[%c0_19, %c0_20, %c0_21, %c0_22] : memref<1x2x16x128xf32, #tpu.memory_space<vmem>>, vector<1x1x16x128xf32>
    %23 = vector.shape_cast %22 : vector<1x1x16x128xf32> to vector<16x128xf32>
    %24 = vector.shape_cast %21 : vector<16x128xf32> to vector<1x1x16x128xf32>
    tpu.vector_store %arg4[%c0_19, %c0_20, %c0_21, %c0_22], %24 {strides = array<i32>} : memref<1x2x16x128xf32, #tpu.memory_space<vmem>>, vector<1x1x16x128xf32>,
    %25 = vector.extract_strided_slice %20 {offsets = [0, 128], sizes = [16, 128], strides = [1, 1]} : vector<16x256xf32> to vector<16x128xf32>
    %c0_23 = arith.constant 0 : index
    %c1_24 = arith.constant 1 : index
    %c0_25 = arith.constant 0 : index
    %c0_26 = arith.constant 0 : index
    %26 = vector.load %arg4[%c0_23, %c1_24, %c0_25, %c0_26] : memref<1x2x16x128xf32, #tpu.memory_space<vmem>>, vector<1x1x16x128xf32>
    %27 = vector.shape_cast %26 : vector<1x1x16x128xf32> to vector<16x128xf32>
    %28 = vector.shape_cast %25 : vector<16x128xf32> to vector<1x1x16x128xf32>
    tpu.vector_store %arg4[%c0_23, %c1_24, %c0_25, %c0_26], %28 {strides = array<i32>} : memref<1x2x16x128xf32, #tpu.memory_space<vmem>>, vector<1x1x16x128xf32>,
    return
  }
  func.func @transform_0(%arg0: i32) -> (i32, i32, i32) {
    %c0_i32 = arith.constant 0 : i32
    %c0_i32_0 = arith.constant 0 : i32
    %c0_i32_1 = arith.constant 0 : i32
    return %arg0, %c0_i32, %c0_i32_0 : i32, i32, i32
  }
  func.func @transform_1(%arg0: i32) -> (i32, i32, i32) {
    %c0_i32 = arith.constant 0 : i32
    %c0_i32_0 = arith.constant 0 : i32
    %c0_i32_1 = arith.constant 0 : i32
    %c0_i32_2 = arith.constant 0 : i32
    return %c0_i32, %c0_i32_0, %c0_i32_1 : i32, i32, i32
  }
  func.func @transform_2(%arg0: i32) -> (i32, i32) {
    %c0_i32 = arith.constant 0 : i32
    %c0_i32_0 = arith.constant 0 : i32
    %c0_i32_1 = arith.constant 0 : i32
    return %c0_i32, %c0_i32_0 : i32, i32
  }
  func.func @transform_3(%arg0: i32) -> (i32, i32, i32, i32) {
    %c0_i32 = arith.constant 0 : i32
    %c0_i32_0 = arith.constant 0 : i32
    %c0_i32_1 = arith.constant 0 : i32
    %c0_i32_2 = arith.constant 0 : i32
    return %arg0, %c0_i32, %c0_i32_0, %c0_i32_1 : i32, i32, i32, i32
  }
}

</mosaic_0001>

<bundles_post_ra>
// kernel: tile.8
= control target key start
LH: loop header
LB: loop body
LE: loop exit
PB: predicated region body
PF: predicated region fallthrough
CT: control target
= control target key end

     0   :  { %s64_s0 = inlined_call_operand.vmem [shape: f32[4], index: 0, kind: input, shape index: {}]   ;;  %s65_s1 = inlined_call_operand.vmem [shape: f32[64,4], index: 1, kind: output, shape index: {}]  }
   0x1   :  { %v4_v0 = vld [vmem:[%s64_s0] ss:$0 sm:$0xff] }
   0x2   :  { %5 = vst [vmem:[%s65_s1] sm:$0xff] %v4_v0  ;;  %20 = vst [vmem:[%s65_s1 + $0x8] sm:$0xff] %v4_v0 }
   0x3   :  { %21 = vst [vmem:[%s65_s1 + $0x10] sm:$0xff] %v4_v0  ;;  %22 = vst [vmem:[%s65_s1 + $0x18] sm:$0xff] %v4_v0 }
   0x4   :  { %23 = vst [vmem:[%s65_s1 + $0x20] sm:$0xff] %v4_v0  ;;  %24 = vst [vmem:[%s65_s1 + $0x28] sm:$0xff] %v4_v0 }
   0x5   :  { %25 = vst [vmem:[%s65_s1 + $0x30] sm:$0xff] %v4_v0  ;;  %26 = vst [vmem:[%s65_s1 + $0x38] sm:$0xff] %v4_v0 }

// kernel: tile.9
= control target key start
LH: loop header
LB: loop body
LE: loop exit
PB: predicated region body
PF: predicated region fallthrough
CT: control target
= control target key end

     0   :  { %vm5_vm0 = vcmask 1041409   ;;  %s425_s14 = smov 124   ;;  %s426_s21 = smov 116   ;;  %vm7_vm1 = vcmask 31744   ;;  %vm17_vm2 = vcmask 1048544   ;;  %vm27_vm3 = vcmask 1015744   ;;  %s696_s0 = inlined_call_operand.vmem [shape: f32[64,4], index: 0, kind: input, shape index: {}]   ;;  %s697_s1 = inlined_call_operand.vmem [shape: f32[1,256], index: 1, kind: output, shape index: {}]  }
   0x1   :  { %v331_v0 = vld [vmem:[%s696_s0 + $0x1f] sm:$0x1]   ;;  %v335_v3 = vld [vmem:[%s696_s0 + $0x1d] sm:$0x1]   ;;  %v333_v6 = vld [vmem:[%s696_s0 + $0x1e] sm:$0x1]  }
   0x2   :  { %v332_v1 = vld [vmem:[%s696_s0 + $0x3e] sm:$0x2]   ;;  %v336_v4 = vld [vmem:[%s696_s0 + $0x3c] sm:$0x2]   ;;  %v334_v7 = vld [vmem:[%s696_s0 + $0x3d] sm:$0x2]  }
   0x3   :  { %v14_v2 = vsel %vm5_vm0, %v332_v1, %v331_v0  ;;  %v34_v5 = vsel %vm5_vm0, %v336_v4, %v335_v3  ;;  %v337_v8 = vld [vmem:[%s696_s0 + $0x1c] sm:$0x1]   ;;  %v24_v9 = vsel %vm5_vm0, %v334_v7, %v333_v6  ;;  %v339_v12 = vld [vmem:[%s696_s0 + $0x1b] sm:$0x1]   ;;  %v341_v14 = vld [vmem:[%s696_s0 + $0x1a] sm:$0x1]  }
   0x4   :  { %15 = vrot.lane.b32.xlu0 %v14_v2, %s425_s14  ;;  %35 = vrot.lane.b32.xlu1 %v34_v5, %s426_s21  ;;  %v338_v10 = vld [vmem:[%s696_s0 + $0x3b] sm:$0x2]   ;;  %v340_v13 = vld [vmem:[%s696_s0 + $0x3a] sm:$0x2]   ;;  %s427_s3 = smov 120   ;;  %s428_s4 = smov 112  }
   0x5   :  { %v44_v11 = vsel %vm5_vm0, %v338_v10, %v337_v8  ;;  %v342_v15 = vld [vmem:[%s696_s0 + $0x39] sm:$0x2]   ;;  %v54_v16 = vsel %vm5_vm0, %v340_v13, %v339_v12  ;;  %v343_v18 = vld [vmem:[%s696_s0 + $0x19] sm:$0x1]   ;;  %v345_v20 = vld [vmem:[%s696_s0 + $0x18] sm:$0x1]  }
   0x6   :  { %v64_v17 = vsel %vm5_vm0, %v342_v15, %v341_v14  ;;  %v344_v19 = vld [vmem:[%s696_s0 + $0x38] sm:$0x2]   ;;  %v346_v21 = vld [vmem:[%s696_s0 + $0x37] sm:$0x2]   ;;  %s429_s13 = smov 108   ;;  %s430_s14 = smov 104  }
   0x7   :  { %v74_v22 = vsel %vm5_vm0, %v344_v19, %v343_v18  ;;  %v84_v23 = vsel %vm5_vm0, %v346_v21, %v345_v20  ;;  %v347_v24 = vld [vmem:[%s696_s0 + $0x17] sm:$0x1]   ;;  %v349_v26 = vld [vmem:[%s696_s0 + $0x16] sm:$0x1]   ;;  %s431_s23 = smov 100   ;;  %s432_s24 = smov 96  }
   0x8   :  { %25 = vrot.lane.b32.xlu0 %v24_v9, %s427_s3  ;;  %45 = vrot.lane.b32.xlu1 %v44_v11, %s428_s4  ;;  %v348_v25 = vld [vmem:[%s696_s0 + $0x36] sm:$0x2]   ;;  %v350_v27 = vld [vmem:[%s696_s0 + $0x35] sm:$0x2]   ;;  %s433_s4 = smov 92   ;;  %s434_s5 = smov 88  }
   0x9   :  { %v94_v28 = vsel %vm5_vm0, %v348_v25, %v347_v24  ;;  %v104_v29 = vsel %vm5_vm0, %v350_v27, %v349_v26  ;;  %v351_v30 = vld [vmem:[%s696_s0 + $0x15] sm:$0x1]   ;;  %v353_v32 = vld [vmem:[%s696_s0 + $0x14] sm:$0x1]   ;;  %v355_v36 = vld [vmem:[%s696_s0 + $0x13] sm:$0x1]  }
   0xa   :  { %v352_v31 = vld [vmem:[%s696_s0 + $0x34] sm:$0x2]   ;;  %v354_v33 = vld [vmem:[%s696_s0 + $0x33] sm:$0x2]   ;;  %v356_v37 = vld [vmem:[%s696_s0 + $0x32] sm:$0x2]  }
   0xb   :  { %v114_v34 = vsel %vm5_vm0, %v352_v31, %v351_v30  ;;  %v124_v35 = vsel %vm5_vm0, %v354_v33, %v353_v32  ;;  %v357_v38 = vld [vmem:[%s696_s0 + $0x12] sm:$0x1]   ;;  %s436_s15 = smov 80   ;;  %v134_v40 = vsel %vm5_vm0, %v356_v37, %v355_v36  ;;  %v359_v42 = vld [vmem:[%s696_s0 + $0x11] sm:$0x1]   ;;  %s438_s29 = smov 72  }
   0xc   :  { %55 = vrot.lane.b32.xlu0 %v54_v16, %s429_s13  ;;  %65 = vrot.lane.b32.xlu1 %v64_v17, %s430_s14  ;;  %v358_v39 = vld [vmem:[%s696_s0 + $0x31] sm:$0x2]   ;;  %s435_s14 = smov 84   ;;  %v360_v43 = vld [vmem:[%s696_s0 + $0x30] sm:$0x2]   ;;  %s439_s9 = smov 68  }
   0xd   :  { %v144_v41 = vsel %vm5_vm0, %v358_v39, %v357_v38  ;;  %v361_v44 = vld [vmem:[%s696_s0 + $0x10] sm:$0x1]   ;;  %v2_v46 = vld [vmem:[%s696_s0] sm:$0x1]   ;;  %v154_v48 = vsel %vm5_vm0, %v360_v43, %v359_v42  ;;  %v363_v51 = vld [vmem:[%s696_s0 + $0xf] sm:$0x1]  }
   0xe   :  { %v362_v45 = vld [vmem:[%s696_s0 + $0x2f] sm:$0x2]   ;;  %v330_v47 = vld [vmem:[%s696_s0 + $0x1f] sm:$0x2]   ;;  %v364_v52 = vld [vmem:[%s696_s0 + $0x2e] sm:$0x2]  }
   0xf   :  { %v6_v49 = vsel %vm5_vm0, %v330_v47, %v2_v46  ;;  %v164_v50 = vsel %vm5_vm0, %v362_v45, %v361_v44  ;;  %v365_v53 = vld [vmem:[%s696_s0 + $0xe] sm:$0x1]   ;;  %s440_s10 = smov 64   ;;  %v174_v55 = vsel %vm5_vm0, %v364_v52, %v363_v51  ;;  %v367_v57 = vld [vmem:[%s696_s0 + $0xd] sm:$0x1]   ;;  %s441_s19 = smov 60  }
  0x10   :  { %75 = vrot.lane.b32.xlu0 %v74_v22, %s431_s23  ;;  %85 = vrot.lane.b32.xlu1 %v84_v23, %s432_s24  ;;  %s437_s24 = smov 76   ;;  %8 = vst.msk [vmem:[#allocation0] ss:$8 sm:$0x3] %vm7_vm1, %v6_v49   ;;  %v366_v54 = vld [vmem:[%s696_s0 + $0x2d] sm:$0x2]  }
  0x11   :  { %v184_v56 = vsel %vm5_vm0, %v366_v54, %v365_v53  ;;  %v368_v58 = vld [vmem:[%s696_s0 + $0x2c] sm:$0x2]   ;;  %v369_v59 = vld [vmem:[%s696_s0 + $0xc] sm:$0x1]   ;;  %s442_s20 = smov 56   ;;  %s444_s30 = smov 48  }
  0x12   :  { %v370_v60 = vld [vmem:[%s696_s0 + $0x2b] sm:$0x2]   ;;  %v194_v61 = vsel %vm5_vm0, %v368_v58, %v367_v57  ;;  %v371_v63 = vld [vmem:[%s696_s0 + $0xb] sm:$0x1]   ;;  %v373_v1 = vld [vmem:[%s696_s0 + $0xa] sm:$0x1]  }
  0x13   :  { %v204_v62 = vsel %vm5_vm0, %v370_v60, %v369_v59  ;;  %v372_v0 = vld [vmem:[%s696_s0 + $0x2a] sm:$0x2]   ;;  %v374_v2 = vld [vmem:[%s696_s0 + $0x29] sm:$0x2]   ;;  %v375_v5 = vld [vmem:[%s696_s0 + $0x9] sm:$0x1]  }
  0x14   :  { %95 = vrot.lane.b32.xlu0 %v94_v28, %s433_s4  ;;  %105 = vrot.lane.b32.xlu1 %v104_v29, %s434_s5  ;;  %v214_v3 = vsel %vm5_vm0, %v372_v0, %v371_v63  ;;  %v224_v4 = vsel %vm5_vm0, %v374_v2, %v373_v1  ;;  %v376_v6 = vld [vmem:[%s696_s0 + $0x28] sm:$0x2]   ;;  %v377_v7 = vld [vmem:[%s696_s0 + $0x8] sm:$0x1]   ;;  %s446_s11 = smov 40   ;;  %s448_s21 = smov 32  }
  0x15   :  { %v378_v8 = vld [vmem:[%s696_s0 + $0x27] sm:$0x2]   ;;  %v234_v9 = vsel %vm5_vm0, %v376_v6, %v375_v5  ;;  %v379_v11 = vld [vmem:[%s696_s0 + $0x7] sm:$0x1]   ;;  %v381_v13 = vld [vmem:[%s696_s0 + $0x6] sm:$0x1]  }
  0x16   :  { %v244_v10 = vsel %vm5_vm0, %v378_v8, %v377_v7  ;;  %v380_v12 = vld [vmem:[%s696_s0 + $0x26] sm:$0x2]   ;;  %v382_v14 = vld [vmem:[%s696_s0 + $0x25] sm:$0x2]   ;;  %v383_v17 = vld [vmem:[%s696_s0 + $0x5] sm:$0x1]  }
  0x17   :  { %v254_v15 = vsel %vm5_vm0, %v380_v12, %v379_v11  ;;  %v264_v16 = vsel %vm5_vm0, %v382_v14, %v381_v13  ;;  %v384_v18 = vld [vmem:[%s696_s0 + $0x24] sm:$0x2]   ;;  %v385_v19 = vld [vmem:[%s696_s0 + $0x4] sm:$0x1]   ;;  %s450_s2 = smov 24   ;;  %s452_s12 = smov 16  }
  0x18   :  { %115 = vrot.lane.b32.xlu0 %v114_v34, %s435_s14  ;;  %125 = vrot.lane.b32.xlu1 %v124_v35, %s436_s15  ;;  %v386_v20 = vld [vmem:[%s696_s0 + $0x23] sm:$0x2]   ;;  %v274_v21 = vsel %vm5_vm0, %v384_v18, %v383_v17  ;;  %v387_v23 = vld [vmem:[%s696_s0 + $0x3] sm:$0x1]   ;;  %s454_s17 = smov 8   ;;  %s455_s18 = smov 4  }
  0x19   :  { %v284_v22 = vsel %vm5_vm0, %v386_v20, %v385_v19  ;;  %v388_v24 = vld [vmem:[%s696_s0 + $0x22] sm:$0x2]   ;;  %v389_v25 = vld [vmem:[%s696_s0 + $0x2] sm:$0x1]   ;;  %v391_v29 = vld [vmem:[%s696_s0 + $0x1] sm:$0x1]  }
  0x1a   :  { %v390_v26 = vld [vmem:[%s696_s0 + $0x21] sm:$0x2]   ;;  %v294_v27 = vsel %vm5_vm0, %v388_v24, %v387_v23  ;;  %v392_v30 = vld [vmem:[%s696_s0 + $0x20] sm:$0x2]   ;;  %s453_s0 = smov 12   ;;  %vm37_vm4 = vcmask 982944  }
  0x1b   :  { %v304_v28 = vsel %vm5_vm0, %v390_v26, %v389_v25  ;;  %v314_v31 = vsel %vm5_vm0, %v392_v30, %v391_v29  ;;  %vm47_vm5 = vcmask 950144   ;;  %vm57_vm6 = vcmask 917344  }
  0x1c   :  { %135 = vrot.lane.b32.xlu0 %v134_v40, %s437_s24  ;;  %145 = vrot.lane.b32.xlu1 %v144_v41, %s438_s29  ;;  %s443_s29 = smov 52   ;;  %vm67_vm7 = vcmask 884544   ;;  %vm77_vm8 = vcmask 851744   ;;  %vm87_vm9 = vcmask 818944   ;;  %vm97_vm10 = vcmask 786144  }
  0x1d   :  { %vm107_vm11 = vcmask 753344   ;;  %vm117_vm12 = vcmask 720544   ;;  %vm127_vm13 = vcmask 687744   ;;  %vm137_vm14 = vcmask 654944  }
  0x1e   :  { %vm147_vm15 = vcmask 622144   ;;  %vm157_vm0 = vcmask 589344   ;;  %vm167_vm1 = vcmask 556544  }
  0x20   :  { %155 = vrot.lane.b32.xlu0 %v154_v48, %s439_s9  ;;  %165 = vrot.lane.b32.xlu1 %v164_v50, %s440_s10  ;;  %s445_s10 = smov 44  }
  0x24   :  { %175 = vrot.lane.b32.xlu0 %v174_v55, %s441_s19  ;;  %185 = vrot.lane.b32.xlu1 %v184_v56, %s442_s20  ;;  %s447_s20 = smov 36  }
  0x28   :  { %195 = vrot.lane.b32.xlu0 %v194_v61, %s443_s29  ;;  %205 = vrot.lane.b32.xlu1 %v204_v62, %s444_s30  ;;  %s449_s30 = smov 28  }
  0x2c   :  { %215 = vrot.lane.b32.xlu0 %v214_v3, %s445_s10  ;;  %225 = vrot.lane.b32.xlu1 %v224_v4, %s446_s11  ;;  %s451_s11 = smov 20  }
  0x30   :  { %235 = vrot.lane.b32.xlu0 %v234_v9, %s447_s20  ;;  %245 = vrot.lane.b32.xlu1 %v244_v10, %s448_s21 }
  0x34   :  { %255 = vrot.lane.b32.xlu0 %v254_v15, %s449_s30  ;;  %265 = vrot.lane.b32.xlu1 %v264_v16, %s450_s2 }
  0x38   :  { %275 = vrot.lane.b32.xlu0 %v274_v21, %s451_s11  ;;  %285 = vrot.lane.b32.xlu1 %v284_v22, %s452_s12 }
  0x3c   :  { %295 = vrot.lane.b32.xlu0 %v294_v27, %s453_s0  ;;  %305 = vrot.lane.b32.xlu1 %v304_v28, %s454_s17 }
  0x40   :  { %315 = vrot.lane.b32.xlu0 %v314_v31, %s455_s18 }
  0x76   :  { %v16_v32 = vpop.permute.xlu0 %15   ;;  %v36_v33 = vpop.permute.xlu1 %35  }
  0x77   :  { %18 = vst.msk [vmem:[#allocation0] ss:$8 sm:$0x3] %vm17_vm2, %v16_v32   ;;  %vm177_vm2 = vcmask 523744  }
  0x7a   :  { %v26_v34 = vpop.permute.xlu0 %25   ;;  %v46_v35 = vpop.permute.xlu1 %45  }
  0x7b   :  { %28 = vst.msk [vmem:[#allocation0] ss:$8 sm:$0x3] %vm27_vm3, %v26_v34   ;;  %vm187_vm3 = vcmask 490944  }
  0x7c   :  { %38 = vst.msk [vmem:[#allocation0] ss:$8 sm:$0x3] %vm37_vm4, %v36_v33   ;;  %vm197_vm4 = vcmask 458144  }
  0x7d   :  { %48 = vst.msk [vmem:[#allocation0] ss:$8 sm:$0x3] %vm47_vm5, %v46_v35   ;;  %vm207_vm5 = vcmask 425344  }
  0x7e   :  { %v56_v36 = vpop.permute.xlu0 %55   ;;  %v66_v37 = vpop.permute.xlu1 %65  }
  0x7f   :  { %58 = vst.msk [vmem:[#allocation0] ss:$8 sm:$0x3] %vm57_vm6, %v56_v36   ;;  %vm217_vm6 = vcmask 392544  }
  0x80   :  { %68 = vst.msk [vmem:[#allocation0] ss:$8 sm:$0x3] %vm67_vm7, %v66_v37   ;;  %vm227_vm7 = vcmask 359744  }
  0x82   :  { %v76_v38 = vpop.permute.xlu0 %75   ;;  %v86_v39 = vpop.permute.xlu1 %85  }
  0x83   :  { %78 = vst.msk [vmem:[#allocation0] ss:$8 sm:$0x3] %vm77_vm8, %v76_v38   ;;  %vm237_vm8 = vcmask 326944  }
  0x84   :  { %88 = vst.msk [vmem:[#allocation0] ss:$8 sm:$0x3] %vm87_vm9, %v86_v39   ;;  %vm247_vm9 = vcmask 294144  }
  0x86   :  { %v96_v40 = vpop.permute.xlu0 %95   ;;  %v106_v41 = vpop.permute.xlu1 %105  }
  0x87   :  { %98 = vst.msk [vmem:[#allocation0] ss:$8 sm:$0x3] %vm97_vm10, %v96_v40   ;;  %vm257_vm10 = vcmask 261344  }
  0x88   :  { %108 = vst.msk [vmem:[#allocation0] ss:$8 sm:$0x3] %vm107_vm11, %v106_v41   ;;  %vm267_vm11 = vcmask 228544  }
  0x8a   :  { %v116_v42 = vpop.permute.xlu0 %115   ;;  %v126_v43 = vpop.permute.xlu1 %125  }
  0x8b   :  { %118 = vst.msk [vmem:[#allocation0] ss:$8 sm:$0x3] %vm117_vm12, %v116_v42   ;;  %vm277_vm12 = vcmask 195744  }
  0x8c   :  { %128 = vst.msk [vmem:[#allocation0] ss:$8 sm:$0x3] %vm127_vm13, %v126_v43   ;;  %vm287_vm13 = vcmask 162944  }
  0x8e   :  { %v136_v44 = vpop.permute.xlu0 %135   ;;  %v146_v45 = vpop.permute.xlu1 %145  }
  0x8f   :  { %138 = vst.msk [vmem:[#allocation0] ss:$8 sm:$0x3] %vm137_vm14, %v136_v44   ;;  %vm297_vm14 = vcmask 130144  }
  0x90   :  { %148 = vst.msk [vmem:[#allocation0] ss:$8 sm:$0x3] %vm147_vm15, %v146_v45   ;;  %vm307_vm15 = vcmask 97344  }
  0x92   :  { %v156_v46 = vpop.permute.xlu0 %155   ;;  %v166_v47 = vpop.permute.xlu1 %165  }
  0x93   :  { %158 = vst.msk [vmem:[#allocation0] ss:$8 sm:$0x3] %vm157_vm0, %v156_v46   ;;  %vm317_vm0 = vcmask 64544  }
  0x94   :  { %168 = vst.msk [vmem:[#allocation0] ss:$8 sm:$0x3] %vm167_vm1, %v166_v47  }
  0x96   :  { %v176_v48 = vpop.permute.xlu0 %175   ;;  %v186_v49 = vpop.permute.xlu1 %185  }
  0x97   :  { %178 = vst.msk [vmem:[#allocation0] ss:$8 sm:$0x3] %vm177_vm2, %v176_v48  }
  0x98   :  { %188 = vst.msk [vmem:[#allocation0] ss:$8 sm:$0x3] %vm187_vm3, %v186_v49  }
  0x9a   :  { %v196_v50 = vpop.permute.xlu0 %195   ;;  %v206_v51 = vpop.permute.xlu1 %205  }
  0x9b   :  { %198 = vst.msk [vmem:[#allocation0] ss:$8 sm:$0x3] %vm197_vm4, %v196_v50  }
  0x9c   :  { %208 = vst.msk [vmem:[#allocation0] ss:$8 sm:$0x3] %vm207_vm5, %v206_v51  }
  0x9e   :  { %v216_v52 = vpop.permute.xlu0 %215   ;;  %v226_v53 = vpop.permute.xlu1 %225  }
  0x9f   :  { %218 = vst.msk [vmem:[#allocation0] ss:$8 sm:$0x3] %vm217_vm6, %v216_v52  }
  0xa0   :  { %228 = vst.msk [vmem:[#allocation0] ss:$8 sm:$0x3] %vm227_vm7, %v226_v53  }
  0xa2   :  { %v236_v54 = vpop.permute.xlu0 %235   ;;  %v246_v55 = vpop.permute.xlu1 %245  }
  0xa3   :  { %238 = vst.msk [vmem:[#allocation0] ss:$8 sm:$0x3] %vm237_vm8, %v236_v54  }
  0xa4   :  { %248 = vst.msk [vmem:[#allocation0] ss:$8 sm:$0x3] %vm247_vm9, %v246_v55  }
  0xa6   :  { %v256_v56 = vpop.permute.xlu0 %255   ;;  %v266_v57 = vpop.permute.xlu1 %265  }
  0xa7   :  { %258 = vst.msk [vmem:[#allocation0] ss:$8 sm:$0x3] %vm257_vm10, %v256_v56  }
  0xa8   :  { %268 = vst.msk [vmem:[#allocation0] ss:$8 sm:$0x3] %vm267_vm11, %v266_v57  }
  0xaa   :  { %v276_v58 = vpop.permute.xlu0 %275   ;;  %v286_v59 = vpop.permute.xlu1 %285  }
  0xab   :  { %278 = vst.msk [vmem:[#allocation0] ss:$8 sm:$0x3] %vm277_vm12, %v276_v58  }
  0xac   :  { %288 = vst.msk [vmem:[#allocation0] ss:$8 sm:$0x3] %vm287_vm13, %v286_v59  }
  0xae   :  { %v296_v60 = vpop.permute.xlu0 %295   ;;  %v306_v61 = vpop.permute.xlu1 %305  }
  0xaf   :  { %298 = vst.msk [vmem:[#allocation0] ss:$8 sm:$0x3] %vm297_vm14, %v296_v60  }
  0xb0   :  { %308 = vst.msk [vmem:[#allocation0] ss:$8 sm:$0x3] %vm307_vm15, %v306_v61  }
  0xb2   :  { %v316_v62 = vpop.permute.xlu0 %315  }
  0xb3   :  { %318 = vst.msk [vmem:[#allocation0] ss:$8 sm:$0x3] %vm317_vm0, %v316_v62  }
  0xba   :  { %v322_v63 = vld [vmem:[#allocation0] sm:$0x1]  ;;  %v326_v0 = vld [vmem:[#allocation0 + $0x8] sm:$0x1] }
  0xbb   :  { %324 = vst [vmem:[%s697_s1] sm:$0x1] %v322_v63  ;;  %393 = vst [vmem:[%s697_s1 + $0x1] sm:$0x1] %v326_v0 }

// kernel: up_sample_forward.1
= control target key start
LH: loop header
LB: loop body
LE: loop exit
PB: predicated region body
PF: predicated region fallthrough
CT: control target
= control target key end

     0   :  { %s731_s12 = smov 0   ;;  %s947_s0 = inlined_call_operand.vmem [shape: f32[2,18,72], index: 0, kind: input, shape index: {}]   ;;  %s948_s1 = inlined_call_operand.vmem [shape: f32[3,72,256], index: 1, kind: input, shape index: {}]   ;;  %s949_s2 = inlined_call_operand.vmem [shape: f32[1,256], index: 2, kind: input, shape index: {}]   ;;  %s950_s3 = inlined_call_operand.vmem [shape: f32[2,2,16,128], index: 3, kind: output, shape index: {}]  }
   0x1 LB: > { %s567_s13 = sadd.s32 4294967295, %s708_s12   ;;  %p571_p0 = scmp.ge.s32.totalorder %s708_s12, 1  ;;  %s708_s12 = sphi %s731_s12, %s13_s12  }
   0x2   : > { %p137_p1 = scmp.lt.s32.totalorder %s708_s12, 3 }
   0x4   : > { %p138_p2 = pnand %p571_p0, %p137_p1 }
   0x5   : > { %v186_v0 = vld [vmem:[%s948_s1 + $0x8] sm:$0xff] (!%p138_p2)  ;;  %v188_v1 = vld [vmem:[%s948_s1 + $0x18] sm:$0xff] (!%p138_p2)  ;;  %v185_v5 = vld [vmem:[%s948_s1] sm:$0xff] (!%p138_p2)  ;;  %v710_v7 = vmov (!%p138_p2), 0.0   ;;  %p779_p3 = scmp.lt.s32.totalorder (!%p138_p2), %s567_s13, 1  ;;  %vm203_vm0 = vcmask (!%p138_p2), 588800  }
   0x6   : > { %141 = sbr.rel (%p138_p2) target bundleno = 262 (0x106), region = 32  ;;  %v578_v2 = vld [vmem:[%s948_s1 + $0x98] sm:$0xff] (!%p138_p2)  ;;  %v622_v3 = vpack.c.bf16 (!%p138_p2), %v188_v1, %v186_v0  ;;  %v580_v4 = vld [vmem:[%s948_s1 + $0xa8] sm:$0xff] (!%p138_p2)  ;;  %v187_v6 = vld [vmem:[%s948_s1 + $0x10] sm:$0xff] (!%p138_p2)  ;;  %274 = vmatprep.mubr.f32.mxu1 (!%p138_p2), %v710_v7  ;;  %382 = vmatprep.mubr.f32.mxu0 (!%p138_p2), %v710_v7 }
   0x7   : > { %v638_v8 = vpack.c.bf16 (!%p138_p2), %v580_v4, %v578_v2  ;;  %v624_v9 = vpack.c.bf16 (!%p138_p2), %v187_v6, %v185_v5  ;;  %v577_v10 = vld [vmem:[%s948_s1 + $0x90] sm:$0xff] (!%p138_p2)  ;;  %v579_v11 = vld [vmem:[%s948_s1 + $0xa0] sm:$0xff] (!%p138_p2)  ;;  %v190_v12 = vld [vmem:[%s948_s1 + $0x28] sm:$0xff] (!%p138_p2) }
   0x8   : > { %623 = vmatprep.subr.bf16.mxu1 (!%p138_p2), %v622_v3  ;;  %v640_v13 = vpack.c.bf16 (!%p138_p2), %v579_v11, %v577_v10  ;;  %v192_v14 = vld [vmem:[%s948_s1 + $0x38] sm:$0xff] (!%p138_p2)  ;;  %v584_v16 = vld [vmem:[%s948_s1 + $0xc8] sm:$0xff] (!%p138_p2)  ;;  %v189_v19 = vld [vmem:[%s948_s1 + $0x20] sm:$0xff] (!%p138_p2) }
   0x9   : > { %v582_v15 = vld [vmem:[%s948_s1 + $0xb8] sm:$0xff] (!%p138_p2)  ;;  %639 = vmatprep.subr.bf16.mxu0 (!%p138_p2), %v638_v8  ;;  %625 = vmatpush1.bf16.msra.mxu1 (!%p138_p2), %v624_v9  ;;  %v626_v17 = vpack.c.bf16 (!%p138_p2), %v192_v14, %v190_v12  ;;  %v191_v20 = vld [vmem:[%s948_s1 + $0x30] sm:$0xff] (!%p138_p2)  ;;  %v583_v23 = vld [vmem:[%s948_s1 + $0xc0] sm:$0xff] (!%p138_p2) }
   0xa   : > { %v642_v18 = vpack.c.bf16 (!%p138_p2), %v584_v16, %v582_v15  ;;  %v581_v21 = vld [vmem:[%s948_s1 + $0xb0] sm:$0xff] (!%p138_p2)  ;;  %641 = vmatpush1.bf16.msra.mxu0 (!%p138_p2), %v640_v13  ;;  %v628_v22 = vpack.c.bf16 (!%p138_p2), %v191_v20, %v189_v19  ;;  %v194_v24 = vld [vmem:[%s948_s1 + $0x48] sm:$0xff] (!%p138_p2)  ;;  %v196_v25 = vld [vmem:[%s948_s1 + $0x58] sm:$0xff] (!%p138_p2) }
   0xb   : > { %627 = vmatprep.subr.bf16.mxu1 (!%p138_p2), %v626_v17  ;;  %v644_v26 = vpack.c.bf16 (!%p138_p2), %v583_v23, %v581_v21  ;;  %v630_v27 = vpack.c.bf16 (!%p138_p2), %v196_v25, %v194_v24  ;;  %v586_v28 = vld [vmem:[%s948_s1 + $0xd8] sm:$0xff] (!%p138_p2)  ;;  %v588_v29 = vld [vmem:[%s948_s1 + $0xe8] sm:$0xff] (!%p138_p2)  ;;  %v193_v30 = vld [vmem:[%s948_s1 + $0x40] sm:$0xff] (!%p138_p2) }
   0xc   : > { %643 = vmatprep.subr.bf16.mxu0 (!%p138_p2), %v642_v18  ;;  %v646_v31 = vpack.c.bf16 (!%p138_p2), %v588_v29, %v586_v28  ;;  %v195_v32 = vld [vmem:[%s948_s1 + $0x50] sm:$0xff] (!%p138_p2)  ;;  %v587_v34 = vld [vmem:[%s948_s1 + $0xe0] sm:$0xff] (!%p138_p2)  ;;  %v198_v36 = vld [vmem:[%s948_s1 + $0x68] sm:$0xff] (!%p138_p2) }
   0xd   : > { %v585_v33 = vld [vmem:[%s948_s1 + $0xd0] sm:$0xff]  ;;  %s953_s13 = smov (!%p779_p3, %s567_s13), 1  ;;  %629 = vmatpush1.bf16.msra.mxu1 %v628_v22  ;;  %v632_v35 = vpack.c.bf16 %v195_v32, %v193_v30  ;;  %v200_v37 = vld [vmem:[%s948_s1 + $0x78] sm:$0xff]  ;;  %v592_v41 = vld [vmem:[%s948_s1 + $0x108] sm:$0xff] }
   0xe   : > { %v590_v38 = vld [vmem:[%s948_s1 + $0xf8] sm:$0xff]  ;;  %645 = vmatpush1.bf16.msra.mxu0 %v644_v26  ;;  %631 = vmatprep.subr.bf16.mxu1 %v630_v27  ;;  %v648_v39 = vpack.c.bf16 %v587_v34, %v585_v33  ;;  %v634_v40 = vpack.c.bf16 %v200_v37, %v198_v36  ;;  %v197_v42 = vld [vmem:[%s948_s1 + $0x60] sm:$0xff]  ;;  %v199_v43 = vld [vmem:[%s948_s1 + $0x70] sm:$0xff]  ;;  %s692_s29 = smul.u32 24, %s953_s13 }
   0xf   : > { %647 = vmatprep.subr.bf16.mxu0 %v646_v31  ;;  %v650_v44 = vpack.c.bf16 %v592_v41, %v590_v38  ;;  %v589_v45 = vld [vmem:[%s948_s1 + $0xf0] sm:$0xff]  ;;  %v591_v46 = vld [vmem:[%s948_s1 + $0x100] sm:$0xff]  ;;  %v636_v47 = vpack.c.bf16 %v199_v43, %v197_v42  ;;  %v202_v49 = vld [vmem:[%s948_s1 + $0x88] sm:$0xff] }
  0x10   : > { %v652_v48 = vpack.c.bf16 %v591_v46, %v589_v45  ;;  %v594_v50 = vld [vmem:[%s948_s1 + $0x118] sm:$0xff]  ;;  %s859_s9 = scalar_lea.vmem %s947_s0, %s692_s29  ;;  %v598_v51 = vld [vmem:[%s948_s1 + $0x128] sm:$0xff]  ;;  %v597_v53 = vld [vmem:[%s948_s1 + $0x120] sm:$0xff] }
  0x11   : > { %633 = vmatpush1.bf16.msra.mxu1 %v632_v35  ;;  %v600_v52 = vld [vmem:[%s948_s1 + $0x138] sm:$0xff]  ;;  %v599_v54 = vld [vmem:[%s948_s1 + $0x130] sm:$0xff]  ;;  %v201_v55 = vld [vmem:[%s948_s1 + $0x80] sm:$0xff] }
  0x12   : > { %649 = vmatpush1.bf16.msra.mxu0 %v648_v39  ;;  %635 = vmatprep.subr.bf16.mxu1 %v634_v40  ;;  %v602_v56 = vld [vmem:[%s948_s1 + $0x148] sm:$0xff]  ;;  %v604_v57 = vld [vmem:[%s948_s1 + $0x158] sm:$0xff]  ;;  %v593_v58 = vld [vmem:[%s948_s1 + $0x110] sm:$0xff]  ;;  %v654_v60 = vpack.c.bf16 %v600_v52, %v598_v51  ;;  %v656_v61 = vpack.c.bf16 %v599_v54, %v597_v53 }
  0x13   : > { %651 = vmatprep.subr.bf16.mxu0 %v650_v44  ;;  %v183_v59 = vld [vmem:[%s859_s9] sm:$0xff]  ;;  %v658_v63 = vpack.c.bf16 %v604_v57, %v602_v56  ;;  %v603_v1 = vld [vmem:[%s948_s1 + $0x150] sm:$0xff]  ;;  %v606_v2 = vld [vmem:[%s948_s1 + $0x168] sm:$0xff] }
  0x14   : > { %v291_v62 = vld [vmem:[%s859_s9 + $0x1] sm:$0xff]  ;;  %v608_v3 = vld [vmem:[%s948_s1 + $0x178] sm:$0xff]  ;;  %v607_v9 = vld [vmem:[%s948_s1 + $0x170] sm:$0xff] }
  0x15   : > { %637 = vmatpush1.bf16.msra.mxu1 %v636_v47  ;;  %v601_v0 = vld [vmem:[%s948_s1 + $0x140] sm:$0xff]  ;;  %v184_v5 = vld [vmem:[%s859_s9 + $0x8] sm:$0xff]  ;;  %v662_v6 = vpack.c.bf16 %v608_v3, %v606_v2  ;;  %v612_v12 = vld [vmem:[%s948_s1 + $0x198] sm:$0xff] }
  0x16   : > { %653 = vmatpush1.bf16.msra.mxu0 %v652_v48  ;;  %226 = vmatprep.subr.mxu1 %v202_v49  ;;  %v660_v4 = vpack.c.bf16 %v603_v1, %v601_v0  ;;  %v605_v8 = vld [vmem:[%s948_s1 + $0x160] sm:$0xff]  ;;  %v292_v10 = vld [vmem:[%s859_s9 + $0x9] sm:$0xff] }
  0x17   : > { %334 = vmatprep.subr.mxu0 %v594_v50  ;;  %v610_v11 = vld [vmem:[%s948_s1 + $0x188] sm:$0xff]  ;;  %v664_v13 = vpack.c.bf16 %v607_v9, %v605_v8  ;;  %v609_v15 = vld [vmem:[%s948_s1 + $0x180] sm:$0xff]  ;;  %v611_v16 = vld [vmem:[%s948_s1 + $0x190] sm:$0xff] }
  0x18   : > { %v666_v14 = vpack.c.bf16 %v612_v12, %v610_v11  ;;  %v668_v17 = vpack.c.bf16 %v611_v16, %v609_v15  ;;  %v614_v18 = vld [vmem:[%s948_s1 + $0x1a8] sm:$0xff]  ;;  %v613_v19 = vld [vmem:[%s948_s1 + $0x1a0] sm:$0xff] }
  0x19   : > { %227 = vmatpush1.msra.mxu1 %v201_v55  ;;  %v400_v20 = vld [vmem:[%s859_s9 + $0xa] sm:$0xff]  ;;  %v399_v21 = vld [vmem:[%s859_s9 + $0x2] sm:$0xff]  ;;  %v171_v25 = vld [vmem:[%s949_s2] sm:$0x3]  ;;  %s621_s9 = sshll.u32 %s953_s13, 5 }
  0x1a   : > { %335 = vmatpush1.msra.mxu0 %v593_v58  ;;  %575 = vmatmul.mubr.msk.f32.vlgmr.msra.gmra.mrb[0].mxu1 %vm203_vm0, %v183_v59  ;;  %s170_s5 = scalar_lea.vmem %s950_s3, %s621_s9 }
  0x1b   : > { %655 = vmatprep.subr.bf16.mxu0 %v654_v60  ;;  %670 = vmatprep.subr.bf16.mxu1 %v654_v60 }
  0x1c   : > { %595 = vmatmul.mubr.msk.f32.vlgmr.msra.gmra.mrb[0].mxu0 %vm203_vm0, %v291_v62  ;;  %675 = vmatpush1.bf16.msra.mxu1 %v656_v61 }
  0x1d   : > { %657 = vmatpush1.bf16.msra.mxu0 %v656_v61  ;;  %671 = vmatprep.subr.bf16.mxu1 %v658_v63 }
  0x1e   : > { %659 = vmatprep.subr.bf16.mxu0 %v658_v63  ;;  %280 = vmatprep.mubr.f32.mxu1 %v710_v7 }
  0x1f   : > { %576 = vmatmul.mubr.msk.f32.gmra.mrb[2].mxu1 %vm203_vm0, %v184_v5  ;;  %388 = vmatprep.mubr.f32.mxu0 %v710_v7 }
  0x20   : > { %676 = vmatpush1.bf16.msra.mxu1 %v660_v4  ;;  %596 = vmatmul.mubr.msk.f32.gmra.mrb[2].mxu0 %vm203_vm0, %v292_v10 }
  0x21   : > { %661 = vmatpush1.bf16.msra.mxu0 %v660_v4  ;;  %672 = vmatprep.subr.bf16.mxu1 %v662_v6 }
  0x22   : > { %663 = vmatprep.subr.bf16.mxu0 %v662_v6  ;;  %490 = vmatprep.mubr.f32.mxu0 %v710_v7 }
  0x23   : > { %496 = vmatprep.mubr.f32.mxu1 %v710_v7  ;;  %v173_v7 = vlaneseq }
  0x24   : > { %677 = vmatpush1.bf16.msra.mxu1 %v664_v13 }
  0x25   : > { %665 = vmatpush1.bf16.msra.mxu0 %v664_v13  ;;  %673 = vmatprep.subr.bf16.mxu1 %v666_v14  ;;  %v174_v22 = vshrl.u32 %v173_v7, 7 }
  0x26   : > { %667 = vmatprep.subr.bf16.mxu0 %v666_v14 }
  0x27   : > { %v175_v23 = vsub.s32 0, %v174_v22  ;;  %v179_v26 = vsub.s32 1, %v174_v22 }
  0x28   : > { %678 = vmatpush1.bf16.msra.mxu1 %v668_v17 }
  0x29   : > { %669 = vmatpush1.bf16.msra.mxu0 %v668_v17  ;;  %674 = vmatprep.subr.mxu1 %v614_v18  ;;  %v176_v28 = vrot.slane %v171_v25, %v175_v23  ;;  %v180_v29 = vrot.slane %v171_v25, %v179_v26 }
  0x2a   : > { %442 = vmatprep.subr.mxu0 %v614_v18 }
  0x2c   : > { %679 = vmatpush1.msra.mxu1 %v613_v19 }
  0x2d   : > { %443 = vmatpush1.msra.mxu0 %v613_v19  ;;  %616 = vmatmul.mubr.msk.f32.vlgmr.msra.gmra.mrb[4].mxu1 %vm203_vm0, %v400_v20 }
  0x2e   : > { %615 = vmatmul.mubr.msk.f32.vlgmr.msra.gmra.mrb[0].mxu0 %vm203_vm0, %v399_v21 }
  0xed   : > { %v276_v24 = vpop.f32.mrb[0].mxu1 }
  0xee   : > { %v278_v27 = vpop.f32.mrb[1].mxu1  ;;  %v287_v38 = vadd.f32 %v276_v24, %v176_v28 }
  0xef   : > { %v288_v40 = vadd.f32 %v278_v27, %v180_v29 }
  0xf2   : > { %v282_v30 = vpop.f32.mrb[2].mxu1 }
  0xf3   : > { %v289_v31 = vadd.f32 %v282_v30, %v176_v28  ;;  %v284_v32 = vpop.f32.mrb[3].mxu1  ;;  %v390_v33 = vpop.f32.mrb[2].mxu0 }
  0xf4   : > { %v290_v34 = vadd.f32 %v284_v32, %v180_v29  ;;  %v392_v35 = vpop.f32.mrb[3].mxu0 }
  0xf5   : > { %v397_v36 = vadd.f32 %v390_v33, %v289_v31 }
  0xf6   : > { %v398_v37 = vadd.f32 %v392_v35, %v290_v34 }
 0x100   : > { %v498_v39 = vpop.f32.mrb[4].mxu1 }
 0x101   : > { %v492_v41 = vpop.f32.mrb[0].mxu0  ;;  %v505_v42 = vadd.f32 %v498_v39, %v397_v36  ;;  %v500_v43 = vpop.f32.mrb[5].mxu1 }
 0x102   : > { %v681_v44 = vadd.f32 %v492_v41, %v287_v38  ;;  %v494_v45 = vpop.f32.mrb[1].mxu0  ;;  %v506_v46 = vadd.f32 %v500_v43, %v398_v37 }
 0x103   : > { %508 = vst [vmem:[%s170_s5 + $0x8] sm:$0xff] %v505_v42  ;;  %v683_v47 = vadd.f32 %v494_v45, %v288_v40 }
 0x104   : > { %507 = vst [vmem:[%s170_s5] sm:$0xff] %v681_v44  ;;  %618 = vst [vmem:[%s170_s5 + $0x18] sm:$0xff] %v506_v46 }
 0x105   : > { %617 = vst [vmem:[%s170_s5 + $0x10] sm:$0xff] %v683_v47 }
 0x106 PF: > { %s13_s12 = sadd.s32 1, %s708_s12  }
 0x107   : > { %p10_p4 = scmp.ge.s32.totalorder %s13_s12, 4  }
 0x109   :  { %12 = sbr.rel (!%p10_p4) target bundleno = 1 (0x1), region = 65 }

</bundles_post_ra>
